<compile_context>
chip_gen: v7x
topology: tpu7x:2x2x1
jax: 0.10.0
libtpu: 0.0.40
codegen_flags: <defaults>
</compile_context>

<pallas_src>
import jax
import jax.numpy as jnp
from jax.experimental import pallas as pl
from jax.experimental.pallas import tpu as pltpu


# ---------------------------------------------------------------------------
# In-kernel compute
# ---------------------------------------------------------------------------
def _glu_compute(a, b, o_ref):
    # out = a * sigmoid(b), computed in f32, single cast at the store.
    # Exact sigmoid: kernel is HBM-bound so EUP exp + VPU divide are free slack.
    af = a.astype(jnp.float32)
    bf = b.astype(jnp.float32)
    gate = 1.0 / (1.0 + jnp.exp(-bf))
    o_ref[...] = (af * gate).astype(o_ref.dtype)


def _glu_fused2d_kernel(x_ref, o_ref):
    # x_ref: (tm, 2H) fused block -- one contiguous DMA per step.
    # When H % 128 == 0 both slices are lane-aligned views (no relayout).
    half = o_ref.shape[-1]
    _glu_compute(x_ref[:, :half], x_ref[:, half:], o_ref)


def _glu_fused3d_kernel(x_ref, o_ref):
    # x_ref: (to, 2C, ti) fused block, split on the sublane (middle) axis.
    half = o_ref.shape[1]
    _glu_compute(x_ref[:, :half, :], x_ref[:, half:, :], o_ref)


# ---------------------------------------------------------------------------
# Tiling helpers
# ---------------------------------------------------------------------------
_MIN_PALLAS_BYTES = 64 * 1024        # below this, call overhead dominates -> XLA
_MIN_TILE_BYTES = 2 * 1024 * 1024    # never shrink a tile below ~2 MiB of traffic
_MIN_GRID_STEPS = 8                  # pipelining + megacore sharding target


def _prod(xs):
    p = 1
    for s in xs:
        p *= int(s)
    return p


def _vmem_budget_and_limit():
    """Generation-aware double-buffered (in+out) VMEM budget and scoped limit."""
    try:
        cap = int(pltpu.get_tpu_info().vmem_capacity_bytes)
    except Exception:
        cap = 64 * 1024 * 1024       # conservative default (v7x: 64 MiB per TC)
    budget = max(8 << 20, min(cap * 3 // 8, 48 << 20))   # ~24 MiB v7x, ~48 MiB v5e/v6e
    limit = min(cap - (4 << 20), budget + (8 << 20))     # scoped VMEM limit + headroom
    return budget, int(limit)


def _pick_tile_rows(num_rows, bytes_per_row, align, budget):
    """Largest row-tile whose double-buffered in+out footprint fits `budget`.
    Shrinks (never below ~_MIN_TILE_BYTES of traffic) to keep >= _MIN_GRID_STEPS
    steps when the problem is large.  Returns 0 if even one aligned row group
    exceeds the budget."""
    per_row = 2 * max(int(bytes_per_row), 1)              # x2: double buffering
    t_budget = budget // per_row
    if t_budget < min(align, num_rows):
        return 0
    t = min(int(t_budget), int(num_rows))
    t_steps = -(-num_rows // _MIN_GRID_STEPS)              # cdiv
    floor_rows = -(-_MIN_TILE_BYTES // per_row)
    if t_steps < t and t_steps >= floor_rows:
        t = t_steps
    if t < num_rows and align > 1:
        t = max((t // align) * align, min(align, num_rows))
    return max(int(t), 1)


def _glu_xla(x, dim):
    # Plain-XLA fallback (tiny problems / masked-store regimes): already at roofline.
    a, b = jnp.split(x, 2, axis=dim)
    return (a.astype(jnp.float32) * jax.nn.sigmoid(b.astype(jnp.float32))).astype(x.dtype)


# ---------------------------------------------------------------------------
# Public wrapper (matches torch.nn.GLU(dim).forward)
# ---------------------------------------------------------------------------
def glu(x, dim=-1):
    ndim = x.ndim
    dim = dim % ndim
    two_h = int(x.shape[dim])
    if two_h % 2 != 0:
        raise ValueError(f"GLU: size of split dimension must be even, got {two_h}")
    half = two_h // 2
    dtype = x.dtype
    itemsize = jnp.dtype(dtype).itemsize
    align = max(8, 32 // itemsize)           # packed-sublane multiple: 8 f32 / 16 bf16 / 32 i8
    total_bytes = int(x.size) * itemsize
    budget, vmem_limit = _vmem_budget_and_limit()

    # ------------------------------------------------------------ last-dim split
    if dim == ndim - 1:
        # half < 128 -> masked vst.msk stores; tiny inputs -> call overhead dominates.
        if half < 128 or total_bytes < _MIN_PALLAS_BYTES:
            return _glu_xla(x, dim)

        lead = x.shape[:-1]
        m = _prod(lead)
        x2d = x.reshape(m, two_h)
        row_bytes = (two_h + half) * itemsize          # a + b read + out write per row
        tm = _pick_tile_rows(m, row_bytes, align, budget)
        if tm == 0:
            # TODO(synk): ultra-wide rows (one aligned row group > VMEM budget) would
            # need a lane-axis grid over the split halves; fall back to XLA for now.
            return _glu_xla(x, dim)

        out2d = pl.pallas_call(
            _glu_fused2d_kernel,
            out_shape=jax.ShapeDtypeStruct((m, half), dtype),
            grid_spec=pltpu.PrefetchScalarGridSpec(
                num_scalar_prefetch=0,
                grid=(pl.cdiv(m, tm),),
                in_specs=[pl.BlockSpec((tm, two_h), lambda i: (i, 0))],
                out_specs=pl.BlockSpec((tm, half), lambda i: (i, 0)),
            ),
            compiler_params=pltpu.CompilerParams(
                dimension_semantics=("parallel",),
                vmem_limit_bytes=vmem_limit,
            ),
        )(x2d)
        return out2d.reshape(*lead, half)

    # ------------------------------------------- non-last-dim split (e.g. NCHW C)
    outer = _prod(x.shape[:dim])
    inner = _prod(x.shape[dim + 1:])
    # Narrow lane dims give masked stores; tiny inputs are overhead-dominated.
    if total_bytes < _MIN_PALLAS_BYTES or inner < 128:
        return _glu_xla(x, dim)

    x3d = x.reshape(outer, two_h, inner)               # no moveaxis / HBM transpose
    slab_bytes = (two_h + half) * inner * itemsize     # a + b + out per outer index
    to = _pick_tile_rows(outer, slab_bytes, 1, budget) # leading axis: no (8,128) rule

    if to > 0:
        grid = (pl.cdiv(outer, to),)
        in_specs = [pl.BlockSpec((to, two_h, inner), lambda o: (o, 0, 0))]
        out_spec = pl.BlockSpec((to, half, inner), lambda o: (o, 0, 0))
        dim_sem = ("parallel",)
    else:
        # One (2H, inner) slab alone exceeds the budget: add a lane-axis grid.
        col_bytes = (two_h + half) * itemsize
        ti = budget // (2 * col_bytes)
        if ti < 128:
            # TODO(synk): extreme split-dim extents also need split-axis tiling.
            return _glu_xla(x, dim)
        ti = int(min(ti, inner))
        if ti < inner:
            ti = (ti // 128) * 128                      # lane-aligned column tile
        grid = (outer, pl.cdiv(inner, ti))
        in_specs = [pl.BlockSpec((1, two_h, ti), lambda o, j: (o, 0, j))]
        out_spec = pl.BlockSpec((1, half, ti), lambda o, j: (o, 0, j))
        dim_sem = ("parallel", "parallel")

    out3d = pl.pallas_call(
        _glu_fused3d_kernel,
        out_shape=jax.ShapeDtypeStruct((outer, half, inner), dtype),
        grid_spec=pltpu.PrefetchScalarGridSpec(
            num_scalar_prefetch=0,
            grid=grid,
            in_specs=in_specs,
            out_specs=out_spec,
        ),
        compiler_params=pltpu.CompilerParams(
            dimension_semantics=dim_sem,
            vmem_limit_bytes=vmem_limit,
        ),
    )(x3d)
    return out3d.reshape(*x.shape[:dim], half, *x.shape[dim + 1:])


# ---------------------------------------------------------------------------
# Reference + tests
# ---------------------------------------------------------------------------
def _glu_ref(x, dim=-1):
    a, b = jnp.split(x, 2, axis=dim)
    return a.astype(jnp.float32) * jax.nn.sigmoid(b.astype(jnp.float32))


if __name__ == "__main__":
    key = jax.random.PRNGKey(0)
    ks = jax.random.split(key, 6)

    # 1) Tiny default-dim case (XLA fallback path): (8, 32) -> (8, 16)
    x1 = jax.random.normal(ks[0], (8, 32), dtype=jnp.float32)
    y1 = jax.block_until_ready(glu(x1, dim=-1))
    assert y1.shape == (8, 16)
    assert jnp.allclose(y1, _glu_ref(x1, -1), atol=1e-5, rtol=1e-5)

    # 2) Tiny NCHW channel split (XLA fallback path): (2, 4, 16, 16) -> (2, 2, 16, 16)
    x2 = jax.random.normal(ks[1], (2, 4, 16, 16), dtype=jnp.float32)
    y2 = jax.block_until_ready(glu(x2, dim=1))
    assert y2.shape == (2, 2, 16, 16)
    assert jnp.allclose(y2, _glu_ref(x2, 1), atol=1e-5, rtol=1e-5)

    # 3) Lane-aligned last-dim split in bf16 (Pallas fused 2-D path): (8, 64, 256) -> (8, 64, 128)
    x3 = jax.random.normal(ks[2], (8, 64, 256), dtype=jnp.bfloat16)
    y3 = jax.block_until_ready(glu(x3, dim=-1))
    assert y3.shape == (8, 64, 128)
    assert jnp.allclose(y3.astype(jnp.float32), _glu_ref(x3, -1), atol=2e-2, rtol=2e-2)

    # 4) Non-last-dim split, f32 (Pallas fused 3-D path): (4, 128, 16, 16) -> (4, 64, 16, 16)
    x4 = jax.random.normal(ks[3], (4, 128, 16, 16), dtype=jnp.float32)
    y4 = jax.block_until_ready(glu(x4, dim=1))
    assert y4.shape == (4, 64, 16, 16)
    assert jnp.allclose(y4, _glu_ref(x4, 1), atol=1e-5, rtol=1e-5)

    # 5) Multi-step tiled last-dim split, f32 (Pallas, several grid steps):
    #    (64, 64, 512) -> (64, 64, 256)
    x5 = jax.random.normal(ks[4], (64, 64, 512), dtype=jnp.float32)
    y5 = jax.block_until_ready(glu(x5, dim=-1))
    assert y5.shape == (64, 64, 256)
    assert jnp.allclose(y5, _glu_ref(x5, -1), atol=1e-5, rtol=1e-5)

    # 6) Unaligned (but >= 128) half, last dim (Pallas fused, non-128 slice offset):
    #    (16, 8, 384) -> (16, 8, 192)
    x6 = jax.random.normal(ks[5], (16, 8, 384), dtype=jnp.float32)
    y6 = jax.block_until_ready(glu(x6, dim=-1))
    assert y6.shape == (16, 8, 192)
    assert jnp.allclose(y6, _glu_ref(x6, -1), atol=1e-5, rtol=1e-5)

    print("KERNEL_OK")
</pallas_src>

<mosaic_0001>
module attributes {stable_mosaic.version = 11 : i64} {
  func.func @_glu_fused2d_kernel(%arg0: i32, %arg1: memref<512x256xbf16, #tpu.memory_space<vmem>>, %arg2: memref<512x128xbf16, #tpu.memory_space<vmem>>) attributes {dimension_semantics = [#tpu.dimension_semantics<parallel>], iteration_bounds = array<i64: 1>, scalar_prefetch = 0 : i64, scratch_operands = 0 : i64, tpu.core_type = #tpu.core_type<tc>, window_params = [{transform_indices = @transform_0, window_bounds = array<i64: 512, 256>}, {transform_indices = @transform_1, window_bounds = array<i64: 512, 128>}]} {
    %c0 = arith.constant 0 : index
    %c0_0 = arith.constant 0 : index
    %0 = vector.load %arg1[%c0, %c0_0] : memref<512x256xbf16, #tpu.memory_space<vmem>>, vector<512x128xbf16>
    %c0_1 = arith.constant 0 : index
    %c128 = arith.constant 128 : index
    %1 = vector.load %arg1[%c0_1, %c128] : memref<512x256xbf16, #tpu.memory_space<vmem>>, vector<512x128xbf16>
    %2 = arith.extf %0 : vector<512x128xbf16> to vector<512x128xf32>
    %3 = arith.extf %1 : vector<512x128xbf16> to vector<512x128xf32>
    %cst = arith.constant 0.000000e+00 : f32
    %4 = vector.broadcast %cst : f32 to vector<512x128xf32>
    %5 = arith.subf %4, %3 : vector<512x128xf32>
    %6 = math.exp %5 : vector<512x128xf32>
    %cst_2 = arith.constant 1.000000e+00 : f32
    %7 = vector.broadcast %cst_2 : f32 to vector<512x128xf32>
    %8 = arith.addf %7, %6 : vector<512x128xf32>
    %cst_3 = arith.constant 1.000000e+00 : f32
    %9 = vector.broadcast %cst_3 : f32 to vector<512x128xf32>
    %10 = arith.divf %9, %8 : vector<512x128xf32>
    %11 = arith.mulf %2, %10 : vector<512x128xf32>
    %12 = arith.truncf %11 : vector<512x128xf32> to vector<512x128xbf16>
    %c0_4 = arith.constant 0 : index
    %c0_5 = arith.constant 0 : index
    %13 = vector.load %arg2[%c0_4, %c0_5] : memref<512x128xbf16, #tpu.memory_space<vmem>>, vector<512x128xbf16>
    tpu.vector_store %arg2[%c0_4, %c0_5], %12 {strides = array<i32>} : memref<512x128xbf16, #tpu.memory_space<vmem>>, vector<512x128xbf16>,
    return
  }
  func.func @transform_0(%arg0: i32) -> (i32, i32) {
    %c0_i32 = arith.constant 0 : i32
    %c0_i32_0 = arith.constant 0 : i32
    return %arg0, %c0_i32 : i32, i32
  }
  func.func @transform_1(%arg0: i32) -> (i32, i32) {
    %c0_i32 = arith.constant 0 : i32
    %c0_i32_0 = arith.constant 0 : i32
    return %arg0, %c0_i32 : i32, i32
  }
}

</mosaic_0001>

<bundles_post_ra>
// kernel: tpu_custom_call.1
= control target key start
LH: loop header
LB: loop body
LE: loop exit
PB: predicated region body
PF: predicated region fallthrough
CT: control target
= control target key end

     0   :  { %6 = vsyncpa [#allocation3], 0  ;;  %s2083_s0 = inlined_call_operand.hbm [shape: bf16[512,256], index: 0, kind: input, shape index: {}]   ;;  %s2084_s1 = inlined_call_operand.hbm [shape: bf16[512,128], index: 1, kind: output, shape index: {}]  }
   0x1   :  { %7 = vsyncpa [#allocation4], 0  ;;  %s1693_s6 = smov [#allocation2]   ;;  %s1645_s10 = scalar_lea.hbm %s2083_s0, 8192 }
   0x2   :  { %s13_s7 = sshll.u32 %s1693_s6, 4  ;;  %p1646_p0 = scmp.ne.s32.totalorder %s2083_s0, %s1645_s10  ;;  %s14_s7 = int_to_ptr.vmem [resolvable:$true] %s13_s7 }
   0x3   :  { %p1649_p1 = scmp.lt.u32.totalorder %s1645_s10, %s2083_s0 }
   0x5   :  { %p1651_p2 = pnand %p1649_p1, %p1646_p0 }
   0x7   :  { %1654 = shalt.err (!%p1651_p2)
}
   0x8   :  { %s1655_s15 = scalar_lea.vmem %s14_s7, 8192  ;;  %p1660_p4 = scmp.lt.s32.totalorder %s14_s7, %s14_s7 }
   0x9   :  { %p1656_p3 = scmp.ne.s32.totalorder %s14_s7, %s1655_s15  ;;  %p1661_p5 = scmp.lt.s32.totalorder %s1655_s15, %s1655_s15 }
   0xb   :  { %p1662_p6 = por %p1661_p5, %p1660_p4 }
   0xd   :  { %p1663_p7 = pnand %p1662_p6, %p1656_p3 }
   0xf   :  { %1666 = shalt.err (!%p1663_p7)
}
  0x10   :  { %s1694_s16 = smov 128   ;;  %s1695_s17 = smov 8  }
  0x11   :  { %19 = dma.hbm_to_vmem [thread:$0]  %s2083_s0, 8192, %s14_s7, [#allocation3], %s1694_s16, %s1694_s16, %s1695_s17  }
  0x12   :  { %1689 = dma.done.wait [#allocation3], 8192  }
  0x13   :  { %1690 = vsyncadd [#allocation3], 4294959104  ;;  %v1721_v0 = vld [vmem:[#allocation2] sm:$0xff]   ;;  %v1723_v1 = vld [vmem:[#allocation2 + $0x8] sm:$0xff]   ;;  %s1696_s0 = smov [#allocation5]  }
  0x14   :  { %v1725_v2 = vld [vmem:[#allocation2 + $0x10] sm:$0xff]   ;;  %v215_v3 = vunpack.c.h.bf16 %v1721_v0  ;;  %v216_v4 = vunpack.c.h.bf16 %v1723_v1  ;;  %v1729_v5 = vld [vmem:[#allocation2 + $0x18] sm:$0xff]   ;;  %v1731_v6 = vld [vmem:[#allocation2 + $0x20] sm:$0xff]   ;;  %v151_v42 = vunpack.c.l.bf16 %v1721_v0  ;;  %v152_v43 = vunpack.c.l.bf16 %v1723_v1  ;;  %s1052_s20 = sshll.u32 %s1696_s0, 4  ;;  %s1053_s20 = int_to_ptr.vmem [resolvable:$true] %s1052_s20 }
  0x15   :  { %v1733_v7 = vld [vmem:[#allocation2 + $0x28] sm:$0xff]   ;;  %v217_v8 = vunpack.c.h.bf16 %v1725_v2  ;;  %v218_v9 = vunpack.c.h.bf16 %v1729_v5  ;;  %v219_v14 = vunpack.c.h.bf16 %v1731_v6  ;;  %v1739_v16 = vld [vmem:[#allocation2 + $0x30] sm:$0xff]   ;;  %v1741_v17 = vld [vmem:[#allocation2 + $0x38] sm:$0xff]   ;;  %v153_v49 = vunpack.c.l.bf16 %v1725_v2  ;;  %s1667_s21 = scalar_lea.vmem %s1053_s20, 4096  ;;  %p1672_p9 = scmp.lt.s32.totalorder %s1053_s20, %s1053_s20 }
  0x16   :  { %v279_v10 = vsub.f32 0.0, %v215_v3  ;;  %v280_v11 = vsub.f32 0.0, %v216_v4  ;;  %v220_v15 = vunpack.c.h.bf16 %v1733_v7  ;;  %v1743_v20 = vld [vmem:[#allocation2 + $0x40] sm:$0xff]   ;;  %v221_v25 = vunpack.c.h.bf16 %v1739_v16  ;;  %v1747_v27 = vld [vmem:[#allocation2 + $0x48] sm:$0xff]   ;;  %v1750_v33 = vld [vmem:[#allocation2 + $0x50] sm:$0xff]   ;;  %p1668_p8 = scmp.ne.s32.totalorder %s1053_s20, %s1667_s21  ;;  %p1673_p10 = scmp.lt.s32.totalorder %s1667_s21, %s1667_s21 }
  0x17   :  { %v281_v12 = vsub.f32 0.0, %v217_v8  ;;  %v282_v13 = vsub.f32 0.0, %v218_v9  ;;  %v283_v23 = vsub.f32 0.0, %v219_v14  ;;  %v222_v26 = vunpack.c.h.bf16 %v1741_v17  ;;  %v1752_v34 = vld [vmem:[#allocation2 + $0x58] sm:$0xff]   ;;  %v1759_v45 = vld [vmem:[#allocation2 + $0x60] sm:$0xff]   ;;  %v1764_v54 = vld [vmem:[#allocation2 + $0x68] sm:$0xff]  }
  0x18   :  { %v343_v18 = vmul.f32 1.442695, %v279_v10  ;;  %v345_v19 = vmul.f32 1.442695, %v280_v11  ;;  %v284_v24 = vsub.f32 0.0, %v220_v15  ;;  %v285_v30 = vsub.f32 0.0, %v221_v25  ;;  %p1674_p11 = por %p1673_p10, %p1672_p9 }
  0x19   :  { %v347_v21 = vmul.f32 1.442695, %v281_v12  ;;  %v349_v22 = vmul.f32 1.442695, %v282_v13  ;;  %v351_v28 = vmul.f32 1.442695, %v283_v23  ;;  %v223_v32 = vunpack.c.h.bf16 %v1743_v20 }
  0x1a   :  { %1389 = vpow2.f32 %v343_v18  ;;  %v353_v29 = vmul.f32 1.442695, %v284_v24  ;;  %v286_v31 = vsub.f32 0.0, %v222_v26  ;;  %v224_v35 = vunpack.c.h.bf16 %v1747_v27  ;;  %v1771_v61 = vld [vmem:[#allocation2 + $0x70] sm:$0xff]   ;;  %v1775_v8 = vld [vmem:[#allocation2 + $0x78] sm:$0xff]   ;;  %v1777_v9 = vld [vmem:[#allocation2 + $0x80] sm:$0xff]   ;;  %p1675_p12 = pnand %p1674_p11, %p1668_p8 }
  0x1b   :  { %1391 = vpow2.f32 %v345_v19  ;;  %v355_v36 = vmul.f32 1.442695, %v285_v30  ;;  %v287_v38 = vsub.f32 0.0, %v223_v32  ;;  %v225_v40 = vunpack.c.h.bf16 %v1750_v33 }
  0x1c   :  { %1393 = vpow2.f32 %v347_v21  ;;  %v357_v37 = vmul.f32 1.442695, %v286_v31  ;;  %v288_v39 = vsub.f32 0.0, %v224_v35  ;;  %v226_v41 = vunpack.c.h.bf16 %v1752_v34  ;;  %v1782_v21 = vld [vmem:[#allocation2 + $0x88] sm:$0xff]  }
  0x1d   :  { %1395 = vpow2.f32 %v349_v22  ;;  %v359_v44 = vmul.f32 1.442695, %v287_v38  ;;  %v289_v47 = vsub.f32 0.0, %v225_v40  ;;  %v154_v50 = vunpack.c.l.bf16 %v1729_v5  ;;  %v1791_v38 = vld [vmem:[#allocation2 + $0x98] sm:$0xff]   ;;  %v1819_v5 = vld [vmem:[#allocation2 + $0xc0] sm:$0xff]  }
  0x1e   :  { %1397 = vpow2.f32 %v351_v28  ;;  %v361_v46 = vmul.f32 1.442695, %v288_v39  ;;  %v290_v48 = vsub.f32 0.0, %v226_v41  ;;  %v155_v51 = vunpack.c.l.bf16 %v1731_v6 }
  0x1f   :  { %1399 = vpow2.f32 %v353_v29  ;;  %v363_v52 = vmul.f32 1.442695, %v289_v47  ;;  %v227_v55 = vunpack.c.h.bf16 %v1759_v45  ;;  %v156_v57 = vunpack.c.l.bf16 %v1733_v7 }
  0x20   :  { %1401 = vpow2.f32 %v355_v36  ;;  %v365_v53 = vmul.f32 1.442695, %v290_v48  ;;  %v157_v58 = vunpack.c.l.bf16 %v1739_v16  ;;  %v158_v59 = vunpack.c.l.bf16 %v1741_v17  ;;  %v1829_v16 = vld [vmem:[#allocation2 + $0xc8] sm:$0xff]  }
  0x21   :  { %1403 = vpow2.f32 %v357_v37  ;;  %v159_v60 = vunpack.c.l.bf16 %v1743_v20  ;;  %v160_v3 = vunpack.c.l.bf16 %v1747_v27  ;;  %v161_v4 = vunpack.c.l.bf16 %v1750_v33  ;;  %v1789_v37 = vld [vmem:[#allocation2 + $0x90] sm:$0xff]  }
  0x22   :  { %1405 = vpow2.f32 %v359_v44  ;;  %v162_v12 = vunpack.c.l.bf16 %v1752_v34  ;;  %v228_v13 = vunpack.c.h.bf16 %v1764_v54  ;;  %v291_v18 = vsub.f32 0.0, %v227_v55 }
  0x23   :  { %1407 = vpow2.f32 %v361_v46  ;;  %v229_v19 = vunpack.c.h.bf16 %v1771_v61  ;;  %v230_v24 = vunpack.c.h.bf16 %v1775_v8  ;;  %v231_v25 = vunpack.c.h.bf16 %v1777_v9 }
  0x24   :  { %v1390_v56 = vpop.eup %1389  ;;  %1409 = vpow2.f32 %v363_v52  ;;  %v163_v29 = vunpack.c.l.bf16 %v1759_v45  ;;  %v164_v30 = vunpack.c.l.bf16 %v1764_v54  ;;  %v292_v35 = vsub.f32 0.0, %v228_v13 }
  0x25   :  { %v1392_v62 = vpop.eup %1391  ;;  %v471_v63 = vadd.f32 1.0, %v1390_v56  ;;  %1411 = vpow2.f32 %v365_v53  ;;  %v232_v36 = vunpack.c.h.bf16 %v1782_v21  ;;  %v367_v41 = vmul.f32 1.442695, %v291_v18  ;;  %v1793_v53 = vld [vmem:[#allocation2 + $0xa0] sm:$0xff]  }
  0x26   :  { %v1394_v10 = vpop.eup %1393  ;;  %v472_v11 = vadd.f32 1.0, %v1392_v62  ;;  %v293_v44 = vsub.f32 0.0, %v229_v19  ;;  %v294_v48 = vsub.f32 0.0, %v230_v24  ;;  %v295_v52 = vsub.f32 0.0, %v231_v25 }
  0x27   :  { %v1396_v14 = vpop.eup %1395  ;;  %1413 = vrcp.f32 %v471_v63  ;;  %v473_v15 = vadd.f32 1.0, %v1394_v10  ;;  %v233_v62 = vunpack.c.h.bf16 %v1789_v37  ;;  %v234_v63 = vunpack.c.h.bf16 %v1791_v38  ;;  %v1797_v10 = vld [vmem:[#allocation2 + $0xa8] sm:$0xff]  }
  0x28   :  { %v1398_v22 = vpop.eup %1397  ;;  %1415 = vrcp.f32 %v472_v11  ;;  %v474_v23 = vadd.f32 1.0, %v1396_v14  ;;  %v369_v13 = vmul.f32 1.442695, %v292_v35  ;;  %v296_v14 = vsub.f32 0.0, %v232_v36 }
  0x29   :  { %v1400_v26 = vpop.eup %1399  ;;  %1417 = vrcp.f32 %v473_v15  ;;  %v475_v28 = vadd.f32 1.0, %v1398_v22  ;;  %v371_v18 = vmul.f32 1.442695, %v293_v44  ;;  %v297_v19 = vsub.f32 0.0, %v233_v62 }
  0x2a   :  { %v1402_v31 = vpop.eup %1401  ;;  %1419 = vrcp.f32 %v474_v23  ;;  %v476_v32 = vadd.f32 1.0, %v1400_v26  ;;  %v235_v22 = vunpack.c.h.bf16 %v1793_v53  ;;  %v298_v25 = vsub.f32 0.0, %v234_v63 }
  0x2b   :  { %v1404_v39 = vpop.eup %1403  ;;  %1421 = vrcp.f32 %v475_v28  ;;  %v477_v40 = vadd.f32 1.0, %v1402_v31  ;;  %v236_v26 = vunpack.c.h.bf16 %v1797_v10  ;;  %v1801_v28 = vld [vmem:[#allocation2 + $0xb0] sm:$0xff]   ;;  %v375_v35 = vmul.f32 1.442695, %v295_v52 }
  0x2c   :  { %v1406_v46 = vpop.eup %1405  ;;  %1423 = vrcp.f32 %v476_v32  ;;  %v478_v47 = vadd.f32 1.0, %v1404_v39  ;;  %v373_v39 = vmul.f32 1.442695, %v294_v48  ;;  %v377_v44 = vmul.f32 1.442695, %v296_v14 }
  0x2d   :  { %v1408_v55 = vpop.eup %1407  ;;  %1425 = vrcp.f32 %v477_v40  ;;  %v479_v56 = vadd.f32 1.0, %v1406_v46  ;;  %v299_v46 = vsub.f32 0.0, %v235_v22  ;;  %v379_v62 = vmul.f32 1.442695, %v297_v19 }
  0x2e   :  { %1427 = vrcp.f32 %v478_v47  ;;  %v480_v11 = vadd.f32 1.0, %v1408_v55  ;;  %v1410_v15 = vpop.eup %1409  ;;  %v1805_v47 = vld [vmem:[#allocation2 + $0xb8] sm:$0xff]   ;;  %v237_v63 = vunpack.c.h.bf16 %v1801_v28  ;;  %v381_v0 = vmul.f32 1.442695, %v298_v25 }
  0x2f   :  { %1429 = vrcp.f32 %v479_v56  ;;  %v1412_v23 = vpop.eup %1411  ;;  %v481_v24 = vadd.f32 1.0, %v1410_v15  ;;  %v238_v1 = vunpack.c.h.bf16 %v1805_v47  ;;  %v383_v19 = vmul.f32 1.442695, %v299_v46 }
  0x30   :  { %1431 = vrcp.f32 %v480_v11  ;;  %v482_v32 = vadd.f32 1.0, %v1412_v23  ;;  %v301_v22 = vsub.f32 0.0, %v237_v63  ;;  %v165_v6 = vunpack.c.l.bf16 %v1771_v61 }
  0x31   :  { %v1414_v31 = vpop.eup %1413  ;;  %1433 = vpow2.f32 %v367_v41  ;;  %v302_v23 = vsub.f32 0.0, %v238_v1  ;;  %v167_v20 = vunpack.c.l.bf16 %v1777_v9  ;;  %v168_v63 = vunpack.c.l.bf16 %v1782_v21 }
  0x32   :  { %v1416_v36 = vpop.eup %1415  ;;  %v663_v40 = vmul.f32 %v1414_v31, %v151_v42  ;;  %1435 = vrcp.f32 %v481_v24  ;;  %v300_v42 = vsub.f32 0.0, %v236_v26  ;;  %v387_v7 = vmul.f32 1.442695, %v301_v22  ;;  %v1851_v22 = vld [vmem:[#allocation2 + $0xe8] sm:$0xff]  }
  0x33   :  { %v1418_v55 = vpop.eup %1417  ;;  %v664_v56 = vmul.f32 %v1416_v36, %v152_v43  ;;  %1437 = vrcp.f32 %v482_v32  ;;  %v166_v32 = vunpack.c.l.bf16 %v1775_v8  ;;  %v169_v33 = vunpack.c.l.bf16 %v1789_v37 }
  0x34   :  { %v1420_v41 = vpop.eup %1419  ;;  %v665_v48 = vmul.f32 %v1418_v55, %v153_v49  ;;  %1439 = vpow2.f32 %v369_v13 }
  0x35   :  { %v1422_v52 = vpop.eup %1421  ;;  %v1195_v11 = vpack.c.bf16 %v664_v56, %v663_v40  ;;  %v666_v14 = vmul.f32 %v1420_v41, %v154_v50  ;;  %1441 = vpow2.f32 %v371_v18  ;;  %v240_v56 = vunpack.c.h.bf16 %v1829_v16 }
  0x36   :  { %v1424_v43 = vpop.eup %1423  ;;  %v667_v15 = vmul.f32 %v1422_v52, %v155_v51  ;;  %1443 = vpow2.f32 %v373_v39  ;;  %v385_v51 = vmul.f32 1.442695, %v300_v42  ;;  %v1847_v52 = vld [vmem:[#allocation2 + $0xe0] sm:$0xff]  }
  0x37   :  { %v1426_v2 = vpop.eup %1425  ;;  %1196 = vst [vmem:[#allocation5] sm:$0xff] %v1195_v11   ;;  %v1200_v49 = vpack.c.bf16 %v666_v14, %v665_v48  ;;  %v668_v13 = vmul.f32 %v1424_v43, %v156_v57  ;;  %1445 = vpow2.f32 %v375_v35  ;;  %v1843_v48 = vld [vmem:[#allocation2 + $0xd8] sm:$0xff]  }
  0x38   :  { %v1428_v50 = vpop.eup %1427  ;;  %v669_v18 = vmul.f32 %v1426_v2, %v157_v58  ;;  %1447 = vpow2.f32 %v377_v44  ;;  %v239_v58 = vunpack.c.h.bf16 %v1819_v5 }
  0x39   :  { %v1430_v24 = vpop.eup %1429  ;;  %1352 = vst [vmem:[#allocation5 + $0x8] sm:$0xff] %v1200_v49   ;;  %v1205_v25 = vpack.c.bf16 %v668_v13, %v667_v15  ;;  %v670_v26 = vmul.f32 %v1428_v50, %v158_v59  ;;  %1449 = vpow2.f32 %v379_v62  ;;  %v389_v59 = vmul.f32 1.442695, %v302_v23  ;;  %v1838_v62 = vld [vmem:[#allocation2 + $0xd0] sm:$0xff]  }
  0x3a   :  { %v1432_v57 = vpop.eup %1431  ;;  %v671_v31 = vmul.f32 %v1430_v24, %v159_v60  ;;  %1451 = vpow2.f32 %v381_v0  ;;  %v303_v60 = vsub.f32 0.0, %v239_v58  ;;  %v304_v15 = vsub.f32 0.0, %v240_v56  ;;  %v1860_v58 = vld [vmem:[#allocation2 + $0xf8] sm:$0xff]  }
  0x3b   :  { %v1434_v39 = vpop.eup %1433  ;;  %1353 = vst [vmem:[#allocation5 + $0x10] sm:$0xff] %v1205_v25   ;;  %v1210_v35 = vpack.c.bf16 %v670_v26, %v669_v18  ;;  %v672_v17 = vmul.f32 %v1432_v57, %v160_v3  ;;  %1453 = vpow2.f32 %v383_v19  ;;  %v242_v19 = vunpack.c.h.bf16 %v1843_v48 }
  0x3c   :  { %v1436_v36 = vpop.eup %1435  ;;  %v483_v40 = vadd.f32 1.0, %v1434_v39  ;;  %1455 = vpow2.f32 %v385_v51  ;;  %v391_v41 = vmul.f32 1.442695, %v303_v60  ;;  %v171_v13 = vunpack.c.l.bf16 %v1793_v53 }
  0x3d   :  { %v1438_v44 = vpop.eup %1437  ;;  %1354 = vst [vmem:[#allocation5 + $0x18] sm:$0xff] %v1210_v35   ;;  %v1215_v46 = vpack.c.bf16 %v672_v17, %v671_v31  ;;  %v673_v55 = vmul.f32 %v1436_v36, %v161_v4  ;;  %1457 = vpow2.f32 %v387_v7  ;;  %v170_v4 = vunpack.c.l.bf16 %v1791_v38  ;;  %v1858_v31 = vld [vmem:[#allocation2 + $0xf0] sm:$0xff]   ;;  %v1899_v38 = vld [vmem:[#allocation2 + $0x120] sm:$0xff]  }
  0x3e   :  { %v1440_v27 = vpop.eup %1439  ;;  %v674_v3 = vmul.f32 %v1438_v44, %v162_v12  ;;  %1459 = vrcp.f32 %v483_v40  ;;  %v241_v12 = vunpack.c.h.bf16 %v1838_v62  ;;  %v243_v23 = vunpack.c.h.bf16 %v1847_v52 }
  0x3f   :  { %v1442_v0 = vpop.eup %1441  ;;  %1355 = vst [vmem:[#allocation5 + $0x20] sm:$0xff] %v1215_v46   ;;  %v484_v42 = vadd.f32 1.0, %v1440_v27  ;;  %1461 = vpow2.f32 %v389_v59  ;;  %v172_v51 = vunpack.c.l.bf16 %v1797_v10  ;;  %v173_v24 = vunpack.c.l.bf16 %v1801_v28 }
  0x40   :  { %v1444_v11 = vpop.eup %1443  ;;  %v1220_v14 = vpack.c.bf16 %v674_v3, %v673_v55  ;;  %v485_v34 = vadd.f32 1.0, %v1442_v0  ;;  %1463 = vpow2.f32 %v391_v41  ;;  %v305_v7 = vsub.f32 0.0, %v241_v12  ;;  %v1864_v3 = vld [vmem:[#allocation2 + $0x100] sm:$0xff]  }
  0x41   :  { %v1446_v1 = vpop.eup %1445  ;;  %1465 = vrcp.f32 %v484_v42  ;;  %v486_v43 = vadd.f32 1.0, %v1444_v11  ;;  %v244_v57 = vunpack.c.h.bf16 %v1851_v22  ;;  %v393_v17 = vmul.f32 1.442695, %v304_v15 }
  0x42   :  { %v1448_v2 = vpop.eup %1447  ;;  %1356 = vst [vmem:[#allocation5 + $0x28] sm:$0xff] %v1220_v14   ;;  %1467 = vrcp.f32 %v485_v34  ;;  %v487_v49 = vadd.f32 1.0, %v1446_v1  ;;  %v306_v59 = vsub.f32 0.0, %v242_v19  ;;  %v307_v60 = vsub.f32 0.0, %v243_v23 }
  0x43   :  { %v1450_v50 = vpop.eup %1449  ;;  %1469 = vrcp.f32 %v486_v43  ;;  %v488_v18 = vadd.f32 1.0, %v1448_v2  ;;  %v308_v44 = vsub.f32 0.0, %v244_v57  ;;  %v245_v56 = vunpack.c.h.bf16 %v1858_v31  ;;  %v1867_v43 = vld [vmem:[#allocation2 + $0x108] sm:$0xff]  }
  0x44   :  { %v1452_v25 = vpop.eup %1451  ;;  %1471 = vrcp.f32 %v487_v49  ;;  %v489_v26 = vadd.f32 1.0, %v1450_v50  ;;  %v246_v27 = vunpack.c.h.bf16 %v1860_v58  ;;  %v174_v0 = vunpack.c.l.bf16 %v1805_v47 }
  0x45   :  { %v1454_v39 = vpop.eup %1453  ;;  %1473 = vrcp.f32 %v488_v18  ;;  %v490_v35 = vadd.f32 1.0, %v1452_v25  ;;  %v395_v11 = vmul.f32 1.442695, %v305_v7  ;;  %v397_v34 = vmul.f32 1.442695, %v306_v59 }
  0x46   :  { %v1456_v36 = vpop.eup %1455  ;;  %1475 = vrcp.f32 %v489_v26  ;;  %v491_v40 = vadd.f32 1.0, %v1454_v39  ;;  %v309_v12 = vsub.f32 0.0, %v245_v56  ;;  %v310_v1 = vsub.f32 0.0, %v246_v27 }
  0x47   :  { %v1458_v46 = vpop.eup %1457  ;;  %1477 = vrcp.f32 %v490_v35  ;;  %v492_v55 = vadd.f32 1.0, %v1456_v36  ;;  %v247_v49 = vunpack.c.h.bf16 %v1864_v3  ;;  %v399_v18 = vmul.f32 1.442695, %v307_v60  ;;  %v1875_v35 = vld [vmem:[#allocation2 + $0x110] sm:$0xff]  }
  0x48   :  { %v1460_v41 = vpop.eup %1459  ;;  %1479 = vrcp.f32 %v491_v40  ;;  %v493_v42 = vadd.f32 1.0, %v1458_v46  ;;  %v401_v25 = vmul.f32 1.442695, %v308_v44  ;;  %v248_v57 = vunpack.c.h.bf16 %v1867_v43 }
  0x49   :  { %v1462_v14 = vpop.eup %1461  ;;  %1481 = vrcp.f32 %v492_v55  ;;  %v675_v19 = vmul.f32 %v1460_v41, %v163_v29  ;;  %v311_v39 = vsub.f32 0.0, %v247_v49  ;;  %v403_v59 = vmul.f32 1.442695, %v309_v12  ;;  %v1904_v49 = vld [vmem:[#allocation2 + $0x128] sm:$0xff]  }
  0x4a   :  { %v1464_v15 = vpop.eup %1463  ;;  %v494_v2 = vadd.f32 1.0, %v1462_v14  ;;  %1483 = vrcp.f32 %v493_v42  ;;  %v312_v54 = vsub.f32 0.0, %v248_v57  ;;  %v249_v61 = vunpack.c.h.bf16 %v1875_v35 }
  0x4b   :  { %v1466_v23 = vpop.eup %1465  ;;  %1485 = vpow2.f32 %v393_v17  ;;  %v495_v50 = vadd.f32 1.0, %v1464_v15  ;;  %v405_v17 = vmul.f32 1.442695, %v310_v1  ;;  %v407_v55 = vmul.f32 1.442695, %v311_v39 }
  0x4c   :  { %v1468_v26 = vpop.eup %1467  ;;  %v676_v7 = vmul.f32 %v1466_v23, %v164_v30  ;;  %1487 = vrcp.f32 %v494_v2  ;;  %v1881_v30 = vld [vmem:[#allocation2 + $0x118] sm:$0xff]   ;;  %v409_v8 = vmul.f32 1.442695, %v312_v54  ;;  %v177_v53 = vunpack.c.l.bf16 %v1838_v62 }
  0x4d   :  { %v1470_v45 = vpop.eup %1469  ;;  %v677_v29 = vmul.f32 %v1468_v26, %v165_v6  ;;  %1489 = vrcp.f32 %v495_v50  ;;  %v250_v9 = vunpack.c.h.bf16 %v1881_v30  ;;  %v179_v28 = vunpack.c.l.bf16 %v1847_v52  ;;  %v1911_v26 = vld [vmem:[#allocation2 + $0x130] sm:$0xff]  }
  0x4e   :  { %v1472_v36 = vpop.eup %1471  ;;  %v1225_v40 = vpack.c.bf16 %v676_v7, %v675_v19  ;;  %v678_v60 = vmul.f32 %v1470_v45, %v166_v32  ;;  %1491 = vpow2.f32 %v395_v11  ;;  %v176_v19 = vunpack.c.l.bf16 %v1829_v16 }
  0x4f   :  { %v1474_v44 = vpop.eup %1473  ;;  %v679_v46 = vmul.f32 %v1472_v36, %v167_v20  ;;  %1493 = vpow2.f32 %v397_v34  ;;  %v313_v20 = vsub.f32 0.0, %v249_v61  ;;  %v175_v34 = vunpack.c.l.bf16 %v1819_v5  ;;  %v1925_v61 = vld [vmem:[#allocation2 + $0x148] sm:$0xff]  }
  0x50   :  { %v1476_v6 = vpop.eup %1475  ;;  %1357 = vst [vmem:[#allocation5 + $0x30] sm:$0xff] %v1225_v40   ;;  %v1230_v56 = vpack.c.bf16 %v678_v60, %v677_v29  ;;  %v680_v27 = vmul.f32 %v1474_v44, %v168_v63  ;;  %1495 = vpow2.f32 %v399_v18  ;;  %v314_v37 = vsub.f32 0.0, %v250_v9  ;;  %v1916_v29 = vld [vmem:[#allocation2 + $0x138] sm:$0xff]   ;;  %v1920_v40 = vld [vmem:[#allocation2 + $0x140] sm:$0xff]  }
  0x51   :  { %v1478_v32 = vpop.eup %1477  ;;  %v681_v41 = vmul.f32 %v1476_v6, %v169_v33  ;;  %1497 = vpow2.f32 %v401_v25  ;;  %v411_v33 = vmul.f32 1.442695, %v313_v20  ;;  %v180_v57 = vunpack.c.l.bf16 %v1851_v22 }
  0x52   :  { %v1480_v42 = vpop.eup %1479  ;;  %1358 = vst [vmem:[#allocation5 + $0x38] sm:$0xff] %v1230_v56   ;;  %v1235_v11 = vpack.c.bf16 %v680_v27, %v679_v46  ;;  %v682_v14 = vmul.f32 %v1478_v32, %v170_v4  ;;  %1499 = vpow2.f32 %v403_v59  ;;  %v181_v39 = vunpack.c.l.bf16 %v1858_v31 }
  0x53   :  { %v1482_v21 = vpop.eup %1481  ;;  %v683_v63 = vmul.f32 %v1480_v42, %v171_v13  ;;  %1501 = vpow2.f32 %v405_v17  ;;  %v413_v13 = vmul.f32 1.442695, %v314_v37  ;;  %v252_v45 = vunpack.c.h.bf16 %v1904_v49 }
  0x54   :  { %v1484_v12 = vpop.eup %1483  ;;  %1359 = vst [vmem:[#allocation5 + $0x40] sm:$0xff] %v1235_v11   ;;  %v1240_v1 = vpack.c.bf16 %v682_v14, %v681_v41  ;;  %v684_v15 = vmul.f32 %v1482_v21, %v172_v51  ;;  %1503 = vpow2.f32 %v407_v55  ;;  %v178_v51 = vunpack.c.l.bf16 %v1843_v48 }
  0x55   :  { %v1486_v4 = vpop.eup %1485  ;;  %v685_v2 = vmul.f32 %v1484_v12, %v173_v24  ;;  %1505 = vpow2.f32 %v409_v8  ;;  %v251_v24 = vunpack.c.h.bf16 %v1899_v38  ;;  %v182_v17 = vunpack.c.l.bf16 %v1860_v58 }
  0x56   :  { %v1488_v23 = vpop.eup %1487  ;;  %1360 = vst [vmem:[#allocation5 + $0x48] sm:$0xff] %v1240_v1   ;;  %v1245_v50 = vpack.c.bf16 %v684_v15, %v683_v63  ;;  %v496_v10 = vadd.f32 1.0, %v1486_v4  ;;  %1507 = vpow2.f32 %v411_v33  ;;  %v183_v36 = vunpack.c.l.bf16 %v1864_v3  ;;  %v1933_v1 = vld [vmem:[#allocation2 + $0x150] sm:$0xff]  }
  0x57   :  { %v1490_v18 = vpop.eup %1489  ;;  %v686_v25 = vmul.f32 %v1488_v23, %v174_v0  ;;  %1509 = vpow2.f32 %v413_v13  ;;  %v184_v44 = vunpack.c.l.bf16 %v1867_v43  ;;  %v185_v46 = vunpack.c.l.bf16 %v1875_v35  ;;  %v1935_v23 = vld [vmem:[#allocation2 + $0x158] sm:$0xff]  }
  0x58   :  { %v1492_v7 = vpop.eup %1491  ;;  %1361 = vst [vmem:[#allocation5 + $0x50] sm:$0xff] %v1245_v50   ;;  %1511 = vrcp.f32 %v496_v10  ;;  %v253_v55 = vunpack.c.h.bf16 %v1911_v26  ;;  %v315_v27 = vsub.f32 0.0, %v251_v24  ;;  %v254_v8 = vunpack.c.h.bf16 %v1916_v29 }
  0x59   :  { %v1494_v47 = vpop.eup %1493  ;;  %v1250_v0 = vpack.c.bf16 %v686_v25, %v685_v2  ;;  %v497_v59 = vadd.f32 1.0, %v1492_v7  ;;  %v316_v9 = vsub.f32 0.0, %v252_v45  ;;  %v255_v20 = vunpack.c.h.bf16 %v1920_v40  ;;  %v1938_v45 = vld [vmem:[#allocation2 + $0x160] sm:$0xff]  }
  0x5a   :  { %v1496_v60 = vpop.eup %1495  ;;  %v498_v54 = vadd.f32 1.0, %v1494_v47  ;;  %v186_v14 = vunpack.c.l.bf16 %v1881_v30  ;;  %v256_v21 = vunpack.c.h.bf16 %v1925_v61  ;;  %v687_v37 = vmul.f32 %v1490_v18, %v175_v34  ;;  %v1940_v47 = vld [vmem:[#allocation2 + $0x168] sm:$0xff]  }
  0x5b   :  { %v1498_v6 = vpop.eup %1497  ;;  %1362 = vst [vmem:[#allocation5 + $0x58] sm:$0xff] %v1250_v0   ;;  %1513 = vrcp.f32 %v497_v59  ;;  %v499_v56 = vadd.f32 1.0, %v1496_v60  ;;  %v317_v12 = vsub.f32 0.0, %v253_v55  ;;  %v415_v2 = vmul.f32 1.442695, %v315_v27 }
  0x5c   :  { %v1500_v32 = vpop.eup %1499  ;;  %1515 = vrcp.f32 %v498_v54  ;;  %v500_v41 = vadd.f32 1.0, %v1498_v6  ;;  %v318_v13 = vsub.f32 0.0, %v254_v8  ;;  %v417_v25 = vmul.f32 1.442695, %v316_v9 }
  0x5d   :  { %v1502_v42 = vpop.eup %1501  ;;  %1517 = vrcp.f32 %v499_v56  ;;  %v501_v11 = vadd.f32 1.0, %v1500_v32  ;;  %v319_v24 = vsub.f32 0.0, %v255_v20  ;;  %v320_v34 = vsub.f32 0.0, %v256_v21 }
  0x5e   :  { %v1504_v63 = vpop.eup %1503  ;;  %1519 = vrcp.f32 %v500_v41  ;;  %v502_v33 = vadd.f32 1.0, %v1502_v42  ;;  %v257_v18 = vunpack.c.h.bf16 %v1933_v1  ;;  %v419_v60 = vmul.f32 1.442695, %v317_v12 }
  0x5f   :  { %v1506_v15 = vpop.eup %1505  ;;  %1521 = vrcp.f32 %v501_v11  ;;  %v503_v4 = vadd.f32 1.0, %v1504_v63  ;;  %v258_v54 = vunpack.c.h.bf16 %v1935_v23  ;;  %v421_v6 = vmul.f32 1.442695, %v318_v13  ;;  %v1947_v11 = vld [vmem:[#allocation2 + $0x170] sm:$0xff]  }
  0x60   :  { %v1508_v50 = vpop.eup %1507  ;;  %1523 = vrcp.f32 %v502_v33  ;;  %v504_v10 = vadd.f32 1.0, %v1506_v15  ;;  %v321_v56 = vsub.f32 0.0, %v257_v18  ;;  %v259_v8 = vunpack.c.h.bf16 %v1938_v45 }
  0x61   :  { %v1510_v7 = vpop.eup %1509  ;;  %1525 = vrcp.f32 %v503_v4  ;;  %v505_v5 = vadd.f32 1.0, %v1508_v50  ;;  %v322_v27 = vsub.f32 0.0, %v258_v54  ;;  %v260_v32 = vunpack.c.h.bf16 %v1940_v47  ;;  %v1953_v4 = vld [vmem:[#allocation2 + $0x178] sm:$0xff]  }
  0x62   :  { %v1512_v0 = vpop.eup %1511  ;;  %1527 = vrcp.f32 %v504_v10  ;;  %v506_v59 = vadd.f32 1.0, %v1510_v7  ;;  %v423_v20 = vmul.f32 1.442695, %v319_v24  ;;  %v425_v42 = vmul.f32 1.442695, %v320_v34 }
  0x63   :  { %v688_v55 = vmul.f32 %v1512_v0, %v176_v19  ;;  %1529 = vrcp.f32 %v505_v5  ;;  %v427_v19 = vmul.f32 1.442695, %v321_v56  ;;  %v323_v63 = vsub.f32 0.0, %v259_v8 }
  0x64   :  { %1531 = vrcp.f32 %v506_v59  ;;  %v429_v15 = vmul.f32 1.442695, %v322_v27  ;;  %v262_v7 = vunpack.c.h.bf16 %v1953_v4  ;;  %v187_v18 = vunpack.c.l.bf16 %v1899_v38 }
  0x65   :  { %v1514_v41 = vpop.eup %1513  ;;  %v1255_v9 = vpack.c.bf16 %v688_v55, %v687_v37  ;;  %1533 = vpow2.f32 %v415_v2  ;;  %v324_v37 = vsub.f32 0.0, %v260_v32  ;;  %v431_v62 = vmul.f32 1.442695, %v323_v63 }
  0x66   :  { %v1516_v21 = vpop.eup %1515  ;;  %v689_v16 = vmul.f32 %v1514_v41, %v177_v53  ;;  %1535 = vpow2.f32 %v417_v25  ;;  %v261_v53 = vunpack.c.h.bf16 %v1947_v11  ;;  %v326_v31 = vsub.f32 0.0, %v262_v7  ;;  %v1983_v41 = vld [vmem:[#allocation2 + $0x190] sm:$0xff]  }
  0x67   :  { %v1518_v33 = vpop.eup %1517  ;;  %1363 = vst [vmem:[#allocation5 + $0x60] sm:$0xff] %v1255_v9   ;;  %v690_v12 = vmul.f32 %v1516_v21, %v178_v51  ;;  %1537 = vpow2.f32 %v419_v60  ;;  %v433_v48 = vmul.f32 1.442695, %v324_v37  ;;  %v188_v54 = vunpack.c.l.bf16 %v1904_v49  ;;  %v2022_v49 = vld [vmem:[#allocation2 + $0x1d0] sm:$0xff]  }
  0x68   :  { %v1520_v2 = vpop.eup %1519  ;;  %v691_v13 = vmul.f32 %v1518_v33, %v179_v28  ;;  %1539 = vpow2.f32 %v421_v6  ;;  %v325_v52 = vsub.f32 0.0, %v261_v53  ;;  %v189_v55 = vunpack.c.l.bf16 %v1911_v26  ;;  %v1976_v6 = vld [vmem:[#allocation2 + $0x188] sm:$0xff]  }
  0x69   :  { %v1522_v50 = vpop.eup %1521  ;;  %v1260_v10 = vpack.c.bf16 %v690_v12, %v689_v16  ;;  %v692_v25 = vmul.f32 %v1520_v2, %v180_v57  ;;  %1541 = vpow2.f32 %v423_v20  ;;  %v437_v3 = vmul.f32 1.442695, %v326_v31 }
  0x6a   :  { %v1524_v51 = vpop.eup %1523  ;;  %v693_v24 = vmul.f32 %v1522_v50, %v181_v39  ;;  %1543 = vpow2.f32 %v425_v42  ;;  %v435_v39 = vmul.f32 1.442695, %v325_v52  ;;  %v192_v32 = vunpack.c.l.bf16 %v1925_v61 }
  0x6b   :  { %v1526_v28 = vpop.eup %1525  ;;  %1364 = vst [vmem:[#allocation5 + $0x68] sm:$0xff] %v1260_v10   ;;  %v1265_v5 = vpack.c.bf16 %v692_v25, %v691_v13  ;;  %v694_v34 = vmul.f32 %v1524_v51, %v182_v17  ;;  %1545 = vpow2.f32 %v427_v19  ;;  %v264_v30 = vunpack.c.h.bf16 %v1976_v6  ;;  %v1993_v13 = vld [vmem:[#allocation2 + $0x1a0] sm:$0xff]   ;;  %v1997_v25 = vld [vmem:[#allocation2 + $0x1a8] sm:$0xff]  }
  0x6c   :  { %v1528_v22 = vpop.eup %1527  ;;  %v695_v57 = vmul.f32 %v1526_v28, %v183_v36  ;;  %1547 = vpow2.f32 %v429_v15  ;;  %v1974_v36 = vld [vmem:[#allocation2 + $0x180] sm:$0xff]   ;;  %v193_v63 = vunpack.c.l.bf16 %v1933_v1  ;;  %v194_v33 = vunpack.c.l.bf16 %v1935_v23 }
  0x6d   :  { %v1530_v0 = vpop.eup %1529  ;;  %1365 = vst [vmem:[#allocation5 + $0x70] sm:$0xff] %v1265_v5   ;;  %v1270_v59 = vpack.c.bf16 %v694_v34, %v693_v24  ;;  %v696_v60 = vmul.f32 %v1528_v22, %v184_v44  ;;  %1549 = vpow2.f32 %v431_v62  ;;  %v190_v44 = vunpack.c.l.bf16 %v1916_v29 }
  0x6e   :  { %v1532_v58 = vpop.eup %1531  ;;  %v697_v17 = vmul.f32 %v1530_v0, %v185_v46  ;;  %1551 = vpow2.f32 %v433_v48  ;;  %v191_v46 = vunpack.c.l.bf16 %v1920_v40  ;;  %v263_v21 = vunpack.c.h.bf16 %v1974_v36  ;;  %v2002_v0 = vld [vmem:[#allocation2 + $0x1b0] sm:$0xff]  }
  0x6f   :  { %v1534_v56 = vpop.eup %1533  ;;  %1366 = vst [vmem:[#allocation5 + $0x78] sm:$0xff] %v1270_v59   ;;  %v1275_v27 = vpack.c.bf16 %v696_v60, %v695_v57  ;;  %v698_v43 = vmul.f32 %v1532_v58, %v186_v14  ;;  %1553 = vpow2.f32 %v435_v39  ;;  %v1987_v14 = vld [vmem:[#allocation2 + $0x198] sm:$0xff]   ;;  %v195_v37 = vunpack.c.l.bf16 %v1938_v45 }
  0x70   :  { %v1536_v8 = vpop.eup %1535  ;;  %v507_v35 = vadd.f32 1.0, %v1534_v56  ;;  %1555 = vpow2.f32 %v437_v3  ;;  %v265_v2 = vunpack.c.h.bf16 %v1983_v41  ;;  %v196_v50 = vunpack.c.l.bf16 %v1940_v47  ;;  %v2004_v3 = vld [vmem:[#allocation2 + $0x1b8] sm:$0xff]   ;;  %v2045_v47 = vld [vmem:[#allocation2 + $0x1e8] sm:$0xff]  }
  0x71   :  { %v1538_v9 = vpop.eup %1537  ;;  %1367 = vst [vmem:[#allocation5 + $0x80] sm:$0xff] %v1275_v27   ;;  %v1280_v20 = vpack.c.bf16 %v698_v43, %v697_v17  ;;  %v508_v42 = vadd.f32 1.0, %v1536_v8  ;;  %v266_v10 = vunpack.c.h.bf16 %v1987_v14  ;;  %v327_v24 = vsub.f32 0.0, %v263_v21  ;;  %v2007_v21 = vld [vmem:[#allocation2 + $0x1c0] sm:$0xff]  }
  0x72   :  { %v1540_v16 = vpop.eup %1539  ;;  %1557 = vrcp.f32 %v507_v35  ;;  %v509_v19 = vadd.f32 1.0, %v1538_v9  ;;  %v328_v7 = vsub.f32 0.0, %v264_v30  ;;  %v197_v5 = vunpack.c.l.bf16 %v1947_v11  ;;  %v2048_v11 = vld [vmem:[#allocation2 + $0x1f0] sm:$0xff]  }
  0x73   :  { %v1542_v12 = vpop.eup %1541  ;;  %1368 = vst [vmem:[#allocation5 + $0x88] sm:$0xff] %v1280_v20   ;;  %1559 = vrcp.f32 %v508_v42  ;;  %v510_v15 = vadd.f32 1.0, %v1540_v16  ;;  %v267_v34 = vunpack.c.h.bf16 %v1993_v13  ;;  %v329_v31 = vsub.f32 0.0, %v265_v2 }
  0x74   :  { %v1544_v62 = vpop.eup %1543  ;;  %1561 = vrcp.f32 %v509_v19  ;;  %v511_v53 = vadd.f32 1.0, %v1542_v12  ;;  %v268_v39 = vunpack.c.h.bf16 %v1997_v25  ;;  %v330_v58 = vsub.f32 0.0, %v266_v10  ;;  %v2010_v12 = vld [vmem:[#allocation2 + $0x1c8] sm:$0xff]  }
  0x75   :  { %v1546_v48 = vpop.eup %1545  ;;  %1563 = vrcp.f32 %v510_v15  ;;  %v512_v51 = vadd.f32 1.0, %v1544_v62  ;;  %v331_v17 = vsub.f32 0.0, %v267_v34  ;;  %v439_v43 = vmul.f32 1.442695, %v327_v24 }
  0x76   :  { %v1548_v52 = vpop.eup %1547  ;;  %1565 = vrcp.f32 %v511_v53  ;;  %v513_v28 = vadd.f32 1.0, %v1546_v48  ;;  %v441_v8 = vmul.f32 1.442695, %v328_v7  ;;  %v332_v20 = vsub.f32 0.0, %v268_v39 }
  0x77   :  { %v1550_v22 = vpop.eup %1549  ;;  %1567 = vrcp.f32 %v512_v51  ;;  %v514_v57 = vadd.f32 1.0, %v1548_v52  ;;  %v269_v42 = vunpack.c.h.bf16 %v2002_v0  ;;  %v443_v16 = vmul.f32 1.442695, %v329_v31 }
  0x78   :  { %v1552_v59 = vpop.eup %1551  ;;  %1569 = vrcp.f32 %v513_v28  ;;  %v515_v60 = vadd.f32 1.0, %v1550_v22  ;;  %v270_v19 = vunpack.c.h.bf16 %v2004_v3  ;;  %v445_v2 = vmul.f32 1.442695, %v330_v58 }
  0x79   :  { %v1554_v56 = vpop.eup %1553  ;;  %1571 = vrcp.f32 %v514_v57  ;;  %v516_v27 = vadd.f32 1.0, %v1552_v59  ;;  %v447_v62 = vmul.f32 1.442695, %v331_v17  ;;  %v333_v53 = vsub.f32 0.0, %v269_v42 }
  0x7a   :  { %v1556_v35 = vpop.eup %1555  ;;  %1573 = vrcp.f32 %v515_v60  ;;  %v517_v9 = vadd.f32 1.0, %v1554_v56  ;;  %v334_v51 = vsub.f32 0.0, %v270_v19  ;;  %v271_v24 = vunpack.c.h.bf16 %v2007_v21  ;;  %v2041_v19 = vld [vmem:[#allocation2 + $0x1e0] sm:$0xff]  }
  0x7b   :  { %1575 = vrcp.f32 %v516_v27  ;;  %v518_v30 = vadd.f32 1.0, %v1556_v35  ;;  %v449_v28 = vmul.f32 1.442695, %v332_v20  ;;  %v272_v34 = vunpack.c.h.bf16 %v2010_v12 }
  0x7c   :  { %v1558_v15 = vpop.eup %1557  ;;  %1577 = vrcp.f32 %v517_v9  ;;  %v451_v31 = vmul.f32 1.442695, %v333_v53  ;;  %v335_v38 = vsub.f32 0.0, %v271_v24  ;;  %v198_v17 = vunpack.c.l.bf16 %v1953_v4 }
  0x7d   :  { %v1560_v10 = vpop.eup %1559  ;;  %v699_v48 = vmul.f32 %v1558_v15, %v187_v18  ;;  %1579 = vrcp.f32 %v518_v30  ;;  %v336_v60 = vsub.f32 0.0, %v272_v34  ;;  %v453_v26 = vmul.f32 1.442695, %v334_v51 }
  0x7e   :  { %v1562_v7 = vpop.eup %1561  ;;  %v700_v52 = vmul.f32 %v1560_v10, %v188_v54  ;;  %1581 = vpow2.f32 %v439_v43  ;;  %v273_v4 = vunpack.c.h.bf16 %v2022_v49 }
  0x7f   :  { %v1564_v22 = vpop.eup %1563  ;;  %v701_v57 = vmul.f32 %v1562_v7, %v189_v55  ;;  %1583 = vpow2.f32 %v441_v8  ;;  %v2027_v55 = vld [vmem:[#allocation2 + $0x1d8] sm:$0xff]   ;;  %v457_v40 = vmul.f32 1.442695, %v336_v60 }
  0x80   :  { %v1566_v18 = vpop.eup %1565  ;;  %v1285_v39 = vpack.c.bf16 %v700_v52, %v699_v48  ;;  %v702_v59 = vmul.f32 %v1564_v22, %v190_v44  ;;  %1585 = vpow2.f32 %v443_v16  ;;  %v455_v44 = vmul.f32 1.442695, %v335_v38  ;;  %v2050_v52 = vld [vmem:[#allocation2 + $0x1f8] sm:$0xff]  }
  0x81   :  { %v1568_v54 = vpop.eup %1567  ;;  %v703_v58 = vmul.f32 %v1566_v18, %v191_v46  ;;  %1587 = vpow2.f32 %v445_v2  ;;  %v274_v61 = vunpack.c.h.bf16 %v2027_v55  ;;  %v337_v1 = vsub.f32 0.0, %v273_v4 }
  0x82   :  { %v1570_v56 = vpop.eup %1569  ;;  %1369 = vst [vmem:[#allocation5 + $0x90] sm:$0xff] %v1285_v39   ;;  %v1290_v27 = vpack.c.bf16 %v702_v59, %v701_v57  ;;  %v704_v29 = vmul.f32 %v1568_v54, %v192_v32  ;;  %1589 = vpow2.f32 %v447_v62  ;;  %v276_v22 = vunpack.c.h.bf16 %v2045_v47 }
  0x83   :  { %v1572_v43 = vpop.eup %1571  ;;  %v705_v8 = vmul.f32 %v1570_v56, %v193_v63  ;;  %1591 = vpow2.f32 %v449_v28  ;;  %v338_v16 = vsub.f32 0.0, %v274_v61  ;;  %v459_v15 = vmul.f32 1.442695, %v337_v1 }
  0x84   :  { %v1574_v46 = vpop.eup %1573  ;;  %1370 = vst [vmem:[#allocation5 + $0x98] sm:$0xff] %v1290_v27   ;;  %v1295_v35 = vpack.c.bf16 %v704_v29, %v703_v58  ;;  %v706_v9 = vmul.f32 %v1572_v43, %v194_v33  ;;  %1593 = vpow2.f32 %v451_v31  ;;  %v277_v18 = vunpack.c.h.bf16 %v2048_v11 }
  0x85   :  { %v1576_v32 = vpop.eup %1575  ;;  %v707_v20 = vmul.f32 %v1574_v46, %v195_v37  ;;  %1595 = vpow2.f32 %v453_v26  ;;  %v461_v62 = vmul.f32 1.442695, %v338_v16  ;;  %v278_v60 = vunpack.c.h.bf16 %v2050_v52 }
  0x86   :  { %v1578_v63 = vpop.eup %1577  ;;  %1371 = vst [vmem:[#allocation5 + $0xa0] sm:$0xff] %v1295_v35   ;;  %v1300_v42 = vpack.c.bf16 %v706_v9, %v705_v8  ;;  %v708_v30 = vmul.f32 %v1576_v32, %v196_v50  ;;  %1597 = vpow2.f32 %v455_v44  ;;  %v275_v50 = vunpack.c.h.bf16 %v2041_v19 }
  0x87   :  { %v1580_v23 = vpop.eup %1579  ;;  %v709_v33 = vmul.f32 %v1578_v63, %v197_v5  ;;  %1599 = vpow2.f32 %v457_v40  ;;  %v340_v56 = vsub.f32 0.0, %v276_v22  ;;  %v341_v43 = vsub.f32 0.0, %v277_v18 }
  0x88   :  { %v1582_v45 = vpop.eup %1581  ;;  %1372 = vst [vmem:[#allocation5 + $0xa8] sm:$0xff] %v1300_v42   ;;  %v1305_v37 = vpack.c.bf16 %v708_v30, %v707_v20  ;;  %v710_v2 = vmul.f32 %v1580_v23, %v198_v17  ;;  %1601 = vpow2.f32 %v459_v15  ;;  %v339_v38 = vsub.f32 0.0, %v275_v50 }
  0x89   :  { %v1584_v53 = vpop.eup %1583  ;;  %v519_v10 = vadd.f32 1.0, %v1582_v45  ;;  %1603 = vpow2.f32 %v461_v62  ;;  %v199_v8 = vunpack.c.l.bf16 %v1974_v36  ;;  %v342_v4 = vsub.f32 0.0, %v278_v60 }
  0x8a   :  { %v1586_v48 = vpop.eup %1585  ;;  %1373 = vst [vmem:[#allocation5 + $0xb0] sm:$0xff] %v1305_v37   ;;  %v1310_v51 = vpack.c.bf16 %v710_v2, %v709_v33  ;;  %v520_v24 = vadd.f32 1.0, %v1584_v53  ;;  %v463_v44 = vmul.f32 1.442695, %v339_v38  ;;  %v200_v35 = vunpack.c.l.bf16 %v1976_v6 }
  0x8b   :  { %v1588_v5 = vpop.eup %1587  ;;  %1605 = vrcp.f32 %v519_v10  ;;  %v521_v7 = vadd.f32 1.0, %v1586_v48  ;;  %v201_v61 = vunpack.c.l.bf16 %v1983_v41  ;;  %v465_v20 = vmul.f32 1.442695, %v340_v56 }
  0x8c   :  { %v1590_v28 = vpop.eup %1589  ;;  %1374 = vst [vmem:[#allocation5 + $0xb8] sm:$0xff] %v1310_v51   ;;  %1607 = vrcp.f32 %v520_v24  ;;  %v522_v34 = vadd.f32 1.0, %v1588_v5  ;;  %v202_v63 = vunpack.c.l.bf16 %v1987_v14  ;;  %v467_v30 = vmul.f32 1.442695, %v341_v43 }
  0x8d   :  { %v1592_v57 = vpop.eup %1591  ;;  %1609 = vrcp.f32 %v521_v7  ;;  %v523_v31 = vadd.f32 1.0, %v1590_v28  ;;  %v203_v23 = vunpack.c.l.bf16 %v1993_v13  ;;  %v469_v33 = vmul.f32 1.442695, %v342_v4 }
  0x8e   :  { %v1594_v39 = vpop.eup %1593  ;;  %1611 = vrcp.f32 %v522_v34  ;;  %v524_v59 = vadd.f32 1.0, %v1592_v57  ;;  %v204_v45 = vunpack.c.l.bf16 %v1997_v25  ;;  %v205_v2 = vunpack.c.l.bf16 %v2002_v0 }
  0x8f   :  { %v1596_v54 = vpop.eup %1595  ;;  %1613 = vrcp.f32 %v523_v31  ;;  %v525_v58 = vadd.f32 1.0, %v1594_v39  ;;  %v206_v10 = vunpack.c.l.bf16 %v2004_v3  ;;  %v207_v48 = vunpack.c.l.bf16 %v2007_v21 }
  0x90   :  { %v1598_v17 = vpop.eup %1597  ;;  %1615 = vrcp.f32 %v524_v59  ;;  %v526_v26 = vadd.f32 1.0, %v1596_v54  ;;  %v208_v5 = vunpack.c.l.bf16 %v2010_v12  ;;  %v209_v3 = vunpack.c.l.bf16 %v2022_v49 }
  0x91   :  { %v1600_v27 = vpop.eup %1599  ;;  %1617 = vrcp.f32 %v525_v58  ;;  %v527_v29 = vadd.f32 1.0, %v1598_v17  ;;  %v210_v38 = vunpack.c.l.bf16 %v2027_v55  ;;  %v211_v43 = vunpack.c.l.bf16 %v2041_v19 }
  0x92   :  { %1619 = vrcp.f32 %v526_v26  ;;  %v528_v40 = vadd.f32 1.0, %v1600_v27  ;;  %v1602_v46 = vpop.eup %1601  ;;  %v213_v4 = vunpack.c.l.bf16 %v2048_v11 }
  0x93   :  { %1621 = vrcp.f32 %v527_v29  ;;  %v1604_v9 = vpop.eup %1603  ;;  %v529_v32 = vadd.f32 1.0, %v1602_v46 }
  0x94   :  { %1623 = vrcp.f32 %v528_v40  ;;  %v530_v42 = vadd.f32 1.0, %v1604_v9  ;;  %v212_v40 = vunpack.c.l.bf16 %v2045_v47 }
  0x95   :  { %v1606_v1 = vpop.eup %1605  ;;  %1625 = vpow2.f32 %v463_v44 }
  0x96   :  { %v1608_v36 = vpop.eup %1607  ;;  %v711_v16 = vmul.f32 %v1606_v1, %v199_v8  ;;  %1627 = vrcp.f32 %v529_v32 }
  0x97   :  { %v1610_v6 = vpop.eup %1609  ;;  %v712_v15 = vmul.f32 %v1608_v36, %v200_v35  ;;  %1629 = vrcp.f32 %v530_v42  ;;  %v214_v35 = vunpack.c.l.bf16 %v2050_v52 }
  0x98   :  { %v1612_v41 = vpop.eup %1611  ;;  %v713_v37 = vmul.f32 %v1610_v6, %v201_v61  ;;  %1631 = vpow2.f32 %v465_v20 }
  0x99   :  { %v1614_v14 = vpop.eup %1613  ;;  %v1315_v62 = vpack.c.bf16 %v712_v15, %v711_v16  ;;  %v714_v53 = vmul.f32 %v1612_v41, %v202_v63  ;;  %1633 = vpow2.f32 %v467_v30 }
  0x9a   :  { %v1616_v50 = vpop.eup %1615  ;;  %v715_v13 = vmul.f32 %v1614_v14, %v203_v23  ;;  %1635 = vpow2.f32 %v469_v33 }
  0x9b   :  { %v1618_v51 = vpop.eup %1617  ;;  %1375 = vst [vmem:[#allocation5 + $0xc0] sm:$0xff] %v1315_v62   ;;  %v1320_v25 = vpack.c.bf16 %v714_v53, %v713_v37  ;;  %v716_v24 = vmul.f32 %v1616_v50, %v204_v45 }
  0x9c   :  { %v1620_v7 = vpop.eup %1619  ;;  %v717_v0 = vmul.f32 %v1618_v51, %v205_v2 }
  0x9d   :  { %v1622_v28 = vpop.eup %1621  ;;  %1376 = vst [vmem:[#allocation5 + $0xc8] sm:$0xff] %v1320_v25   ;;  %v1325_v34 = vpack.c.bf16 %v716_v24, %v715_v13  ;;  %v718_v22 = vmul.f32 %v1620_v7, %v206_v10 }
  0x9e   :  { %v1624_v57 = vpop.eup %1623  ;;  %v719_v31 = vmul.f32 %v1622_v28, %v207_v48 }
  0x9f   :  { %v1626_v21 = vpop.eup %1625  ;;  %1377 = vst [vmem:[#allocation5 + $0xd0] sm:$0xff] %v1325_v34   ;;  %v1330_v18 = vpack.c.bf16 %v718_v22, %v717_v0  ;;  %v720_v39 = vmul.f32 %v1624_v57, %v208_v5 }
  0xa0   :  { %v1628_v59 = vpop.eup %1627  ;;  %v531_v60 = vadd.f32 1.0, %v1626_v21 }
  0xa1   :  { %v1630_v54 = vpop.eup %1629  ;;  %1378 = vst [vmem:[#allocation5 + $0xd8] sm:$0xff] %v1330_v18   ;;  %v1335_v12 = vpack.c.bf16 %v720_v39, %v719_v31  ;;  %v721_v58 = vmul.f32 %v1628_v59, %v209_v3 }
  0xa2   :  { %v1632_v17 = vpop.eup %1631  ;;  %v722_v26 = vmul.f32 %v1630_v54, %v210_v38  ;;  %1637 = vrcp.f32 %v531_v60 }
  0xa3   :  { %v1634_v56 = vpop.eup %1633  ;;  %1379 = vst [vmem:[#allocation5 + $0xe0] sm:$0xff] %v1335_v12   ;;  %v532_v49 = vadd.f32 1.0, %v1632_v17 }
  0xa4   :  { %v1636_v27 = vpop.eup %1635  ;;  %v1340_v29 = vpack.c.bf16 %v722_v26, %v721_v58  ;;  %v533_v44 = vadd.f32 1.0, %v1634_v56 }
  0xa5   :  { %1639 = vrcp.f32 %v532_v49  ;;  %v534_v55 = vadd.f32 1.0, %v1636_v27 }
  0xa6   :  { %1380 = vst [vmem:[#allocation5 + $0xe8] sm:$0xff] %v1340_v29   ;;  %1641 = vrcp.f32 %v533_v44 }
  0xa7   :  { %1643 = vrcp.f32 %v534_v55 }
  0xac   :  { %v1638_v8 = vpop.eup %1637 }
  0xad   :  { %v723_v46 = vmul.f32 %v1638_v8, %v211_v43 }
  0xaf   :  { %v1640_v9 = vpop.eup %1639 }
  0xb0   :  { %v1642_v61 = vpop.eup %1641  ;;  %v724_v32 = vmul.f32 %v1640_v9, %v212_v40 }
  0xb1   :  { %v1644_v20 = vpop.eup %1643  ;;  %v725_v1 = vmul.f32 %v1642_v61, %v213_v4 }
  0xb2   :  { %v1345_v63 = vpack.c.bf16 %v724_v32, %v723_v46  ;;  %v726_v42 = vmul.f32 %v1644_v20, %v214_v35 }
  0xb4   :  { %1381 = vst [vmem:[#allocation5 + $0xf0] sm:$0xff] %v1345_v63   ;;  %v1350_v19 = vpack.c.bf16 %v726_v42, %v725_v1 }
  0xb6   :  { %1382 = vst [vmem:[#allocation5 + $0xf8] sm:$0xff] %v1350_v19  }
  0xb7   :  { %1678 = shalt.err (!%p1675_p12)
}
  0xb8   :  { %s1679_s24 = scalar_lea.hbm %s2084_s1, 4096 }
  0xb9   :  { %p1680_p13 = scmp.ne.s32.totalorder %s2084_s1, %s1679_s24  ;;  %p1683_p0 = scmp.lt.u32.totalorder %s1679_s24, %s2084_s1 }
  0xbb   :  { %p1685_p1 = pnand %p1683_p0, %p1680_p13 }
  0xbd   :  { %1688 = shalt.err (!%p1685_p1)
}
  0xbe   :  { %s1697_s29 = smov 64   ;;  %s1698_s30 = smov 4  }
  0xbf   :  { %1058 = dma.vmem_to_hbm [thread:$0]  %s1053_s20, 4096, %s2084_s1, [#allocation4], %s1697_s29, %s1697_s29, %s1698_s30  }
  0xc0   :  { %1691 = dma.done.wait [#allocation4], 4096  }
  0xc1   :  { %1692 = vsyncadd [#allocation4], 4294963200 }
  0xc2   :  { %1062 = vsyncpa [#allocation3], 1 }
  0xc3   :  { %1063 = vsyncpa [#allocation4], 1 }

</bundles_post_ra>
